<compile_context>
chip_gen: v7x
topology: tpu7x:2x2x1
jax: 0.10.0
libtpu: 0.0.40
codegen_flags: <defaults>
</compile_context>

<pallas_src>
import jax
import jax.numpy as jnp
from jax import lax
from jax.experimental import pallas as pl
from jax.experimental.pallas import tpu as pltpu


def _fused_conv_kernel(w_ref, p_ref, b_ref, out_ref):
    """One lane-dense tile of the fused two-branch convolution (transposed).

    w_ref   : (2*CO, 9*C)  fused transposed weight (1x1 branch on center-tap cols)
    p_ref   : (9*C, TN)    im2col columns for TN output pixels (lane axis = M)
    b_ref   : (2*CO, 1)    fused bias [b_left ; b_right]
    out_ref : (2*CO, TN)   ReLU(w @ p + b)
    """
    acc = jnp.dot(w_ref[...], p_ref[...], preferred_element_type=jnp.float32)
    out_ref[...] = jnp.maximum(acc + b_ref[...], 0.0).astype(out_ref.dtype)


def my_model_forward(x_nchw, w_left, b_left, w_right, b_right, *, num_tiles=1):
    """Forward pass matching the PyTorch MyModel.

    x_nchw    : (B, C, H, W)  float32
    w_left    : (CO, C, 1, 1) PyTorch-layout 1x1 conv weight
    b_left    : (CO,)
    w_right   : (CO, C, 3, 3) PyTorch-layout 3x3 conv weight
    b_right   : (CO,)
    num_tiles : lane-tiles over M = B*H*W.  1 (default) = single grid step,
                best for v5e/v6e; 2 = two balanced 128-aligned tiles (megacore).
    returns   : (B, 2*CO, H, W)
    """
    B, C, H, W = x_nchw.shape
    CO = w_left.shape[0]
    M = B * H * W
    K = 9 * C
    N2 = 2 * CO

    # ---- glue pre-pass: im2col built directly from NCHW (no NHWC transpose).
    # patches_t[tap*C + c, b*H*W + h*W + w] = x_pad[b, c, h+dy, w+dx], tap=dy*3+dx.
    x_pad = jnp.pad(x_nchw, ((0, 0), (0, 0), (1, 1), (1, 1)))      # (B,C,H+2,W+2)
    taps = [x_pad[:, :, dy:dy + H, dx:dx + W]
            for dy in range(3) for dx in range(3)]
    patches_t = jnp.stack(taps, axis=0)                            # (9,B,C,H,W)
    patches_t = patches_t.transpose(0, 2, 1, 3, 4)                 # major-axis only
    patches_t = patches_t.reshape(K, M)                            # (9C, M)

    # ---- fused transposed weight (2*CO, 9*C): rows 0..CO-1 = left 1x1 branch
    # (non-zero only on center-tap columns 4C:5C), rows CO.. = right 3x3 branch.
    w_r = jnp.transpose(w_right, (0, 2, 3, 1)).reshape(CO, K)      # (CO, 9C)
    w_fused = jnp.zeros((N2, K), dtype=x_nchw.dtype)
    w_fused = w_fused.at[CO:, :].set(w_r)
    w_fused = w_fused.at[:CO, 4 * C:5 * C].set(w_left[:, :, 0, 0])
    b_fused = jnp.concatenate([b_left, b_right]).reshape(N2, 1)

    # ---- lane (M) tiling: single block by default; multi-tile blocks must be
    # multiples of 128 lanes (blocks equal to the full dim are exempt).
    if num_tiles > 1:
        tn = -(-M // (num_tiles * 128)) * 128
    else:
        tn = M
    m_pad = tn * num_tiles
    if m_pad != M:
        patches_t = jnp.pad(patches_t, ((0, 0), (0, m_pad - M)))

    cost = pl.CostEstimate(
        flops=2 * m_pad * K * N2,
        transcendentals=0,
        bytes_accessed=4 * (K * m_pad + N2 * K + N2 + N2 * m_pad))

    out_t = pl.pallas_call(
        _fused_conv_kernel,
        out_shape=jax.ShapeDtypeStruct((N2, m_pad), x_nchw.dtype),
        grid_spec=pltpu.PrefetchScalarGridSpec(
            num_scalar_prefetch=0,
            grid=(num_tiles,),
            in_specs=[
                pl.BlockSpec((N2, K), lambda i: (0, 0)),     # resident weight
                pl.BlockSpec((K, tn), lambda i: (0, i)),     # patches lane-tile
                pl.BlockSpec((N2, 1), lambda i: (0, 0)),     # resident bias
            ],
            out_specs=pl.BlockSpec((N2, tn), lambda i: (0, i)),
        ),
        compiler_params=pltpu.CompilerParams(
            dimension_semantics=("parallel",)),
        cost_estimate=cost,
    )(w_fused, patches_t, b_fused)

    # ---- glue post-pass: drop lane padding; (2CO, B, H, W) -> (B, 2CO, H, W)
    # is a major-axis permute only (lane dim W / sublane dim H untouched).
    out_t = out_t[:, :M].reshape(N2, B, H, W)
    return jnp.transpose(out_t, (1, 0, 2, 3))


def _reference_forward(x_nchw, w_left, b_left, w_right, b_right):
    """Pure-JAX reference (lax conv) for correctness checking."""
    dn = lax.conv_dimension_numbers(x_nchw.shape, w_left.shape,
                                    ("NCHW", "OIHW", "NCHW"))
    left = lax.conv_general_dilated(x_nchw, w_left, (1, 1), "VALID",
                                    dimension_numbers=dn)
    left = jax.nn.relu(left + b_left.reshape(1, -1, 1, 1))
    right = lax.conv_general_dilated(x_nchw, w_right, (1, 1), "SAME",
                                     dimension_numbers=dn)
    right = jax.nn.relu(right + b_right.reshape(1, -1, 1, 1))
    return jnp.concatenate([left, right], axis=1)


if __name__ == "__main__":
    key = jax.random.PRNGKey(0)
    k_x, k_wl, k_bl, k_wr, k_br = jax.random.split(key, 5)

    # Shapes implied by the PyTorch spec: batch = [16, 5, 10, 10], MyModel(5).
    B, C, H, W, CO = 16, 5, 10, 10, 10

    x = jax.random.uniform(k_x, (B, C, H, W), dtype=jnp.float32)
    w_left = jax.random.normal(k_wl, (CO, C, 1, 1), dtype=jnp.float32) * 0.1
    b_left = jax.random.normal(k_bl, (CO,), dtype=jnp.float32) * 0.1
    w_right = jax.random.normal(k_wr, (CO, C, 3, 3), dtype=jnp.float32) * 0.1
    b_right = jax.random.normal(k_br, (CO,), dtype=jnp.float32) * 0.1

    out = jax.block_until_ready(
        my_model_forward(x, w_left, b_left, w_right, b_right))

    ref = _reference_forward(x, w_left, b_left, w_right, b_right)
    assert out.shape == (B, 2 * CO, H, W), out.shape
    assert jnp.allclose(out, ref, atol=1e-5, rtol=1e-5), "mismatch vs reference"

    # Also exercise the 2-tile (megacore) path once for correctness.
    out2 = jax.block_until_ready(
        my_model_forward(x, w_left, b_left, w_right, b_right, num_tiles=2))
    assert jnp.allclose(out2, ref, atol=1e-5, rtol=1e-5), "mismatch (2 tiles)"

    print("KERNEL_OK")
</pallas_src>

<mosaic_0001>
module attributes {stable_mosaic.version = 11 : i64} {
  func.func @_fused_conv_kernel(%arg0: i32, %arg1: memref<20x45xf32, #tpu.memory_space<vmem>>, %arg2: memref<45x1600xf32, #tpu.memory_space<vmem>>, %arg3: memref<20x1xf32, #tpu.memory_space<vmem>>, %arg4: memref<20x1600xf32, #tpu.memory_space<vmem>>) attributes {dimension_semantics = [#tpu.dimension_semantics<parallel>], iteration_bounds = array<i64: 1>, scalar_prefetch = 0 : i64, scratch_operands = 0 : i64, tpu.core_type = #tpu.core_type<tc>, window_params = [{pipeline_mode = #tpu.pipeline_mode<synchronous>, transform_indices = @transform_0, window_bounds = array<i64: 20, 45>}, {transform_indices = @transform_1, window_bounds = array<i64: 45, 1600>}, {pipeline_mode = #tpu.pipeline_mode<synchronous>, transform_indices = @transform_2, window_bounds = array<i64: 20, 1>}, {transform_indices = @transform_3, window_bounds = array<i64: 20, 1600>}]} {
    %c0 = arith.constant 0 : index
    %c0_0 = arith.constant 0 : index
    %0 = vector.load %arg1[%c0, %c0_0] : memref<20x45xf32, #tpu.memory_space<vmem>>, vector<20x45xf32>
    %c0_1 = arith.constant 0 : index
    %c0_2 = arith.constant 0 : index
    %1 = vector.load %arg2[%c0_1, %c0_2] : memref<45x1600xf32, #tpu.memory_space<vmem>>, vector<45x1600xf32>
    %cst = arith.constant dense<0.000000e+00> : vector<20x1600xf32>
    %2 = tpu.matmul %0, %1, %cst {dimension_numbers = #tpu.dot_dimension_numbers<[1], [0], [0], [1], [0, 0, 1, 1], [], []>} : vector<20x45xf32>, vector<45x1600xf32>, vector<20x1600xf32> -> vector<20x1600xf32>
    %c0_3 = arith.constant 0 : index
    %c0_4 = arith.constant 0 : index
    %3 = vector.load %arg3[%c0_3, %c0_4] : memref<20x1xf32, #tpu.memory_space<vmem>>, vector<20x1xf32>
    %4 = vector.broadcast %3 : vector<20x1xf32> to vector<20x1600xf32>
    %5 = arith.addf %2, %4 : vector<20x1600xf32>
    %cst_5 = arith.constant 0.000000e+00 : f32
    %6 = vector.broadcast %cst_5 : f32 to vector<20x1600xf32>
    %7 = arith.maximumf %5, %6 : vector<20x1600xf32>
    %c0_6 = arith.constant 0 : index
    %c0_7 = arith.constant 0 : index
    %8 = vector.load %arg4[%c0_6, %c0_7] : memref<20x1600xf32, #tpu.memory_space<vmem>>, vector<20x1600xf32>
    tpu.vector_store %arg4[%c0_6, %c0_7], %7 {strides = array<i32>} : memref<20x1600xf32, #tpu.memory_space<vmem>>, vector<20x1600xf32>,
    return
  }
  func.func @transform_0(%arg0: i32) -> (i32, i32) {
    %c0_i32 = arith.constant 0 : i32
    %c0_i32_0 = arith.constant 0 : i32
    %c0_i32_1 = arith.constant 0 : i32
    return %c0_i32, %c0_i32_0 : i32, i32
  }
  func.func @transform_1(%arg0: i32) -> (i32, i32) {
    %c0_i32 = arith.constant 0 : i32
    %c0_i32_0 = arith.constant 0 : i32
    return %c0_i32, %arg0 : i32, i32
  }
  func.func @transform_2(%arg0: i32) -> (i32, i32) {
    %c0_i32 = arith.constant 0 : i32
    %c0_i32_0 = arith.constant 0 : i32
    %c0_i32_1 = arith.constant 0 : i32
    return %c0_i32, %c0_i32_0 : i32, i32
  }
  func.func @transform_3(%arg0: i32) -> (i32, i32) {
    %c0_i32 = arith.constant 0 : i32
    %c0_i32_0 = arith.constant 0 : i32
    return %c0_i32, %arg0 : i32, i32
  }
}

</mosaic_0001>

<bundles_post_ra>
// kernel: tpu_custom_call.1
= control target key start
LH: loop header
LB: loop body
LE: loop exit
PB: predicated region body
PF: predicated region fallthrough
CT: control target
= control target key end

     0   :  { %8 = vsyncpa [#allocation3], 0  ;;  %s1299_s0 = inlined_call_operand.vmem [shape: f32[20,45], index: 0, kind: input, shape index: {}]   ;;  %s1300_s1 = inlined_call_operand.hbm [shape: f32[45,1600], index: 1, kind: input, shape index: {}]   ;;  %s1301_s2 = inlined_call_operand.vmem [shape: f32[20,1], index: 2, kind: input, shape index: {}]   ;;  %s1302_s3 = inlined_call_operand.hbm [shape: f32[20,1600], index: 3, kind: output, shape index: {}]  }
   0x1   :  { %9 = vsyncpa [#allocation4], 0  ;;  %s1076_s12 = smov [#allocation2]   ;;  %s1028_s16 = scalar_lea.hbm %s1300_s1, 9984 }
   0x2   :  { %s17_s13 = sshll.u32 %s1076_s12, 4  ;;  %p1029_p0 = scmp.ne.s32.totalorder %s1300_s1, %s1028_s16  ;;  %s18_s13 = int_to_ptr.vmem [resolvable:$true] %s17_s13 }
   0x3   :  { %p1032_p1 = scmp.lt.u32.totalorder %s1028_s16, %s1300_s1 }
   0x5   :  { %p1034_p2 = pnand %p1032_p1, %p1029_p0 }
   0x7   :  { %1037 = shalt.err (!%p1034_p2)
}
   0x8   :  { %s1038_s21 = scalar_lea.vmem %s18_s13, 9984  ;;  %p1043_p4 = scmp.lt.s32.totalorder %s18_s13, %s18_s13 }
   0x9   :  { %p1039_p3 = scmp.ne.s32.totalorder %s18_s13, %s1038_s21  ;;  %p1044_p5 = scmp.lt.s32.totalorder %s1038_s21, %s1038_s21 }
   0xb   :  { %p1045_p6 = por %p1044_p5, %p1043_p4 }
   0xd   :  { %p1046_p7 = pnand %p1045_p6, %p1039_p3 }
   0xf   :  { %1049 = shalt.err (!%p1046_p7)
}
  0x10   :  { %s1077_s22 = smov 1664   ;;  %s1078_s23 = smov 104  }
  0x11   :  { %23 = dma.hbm_to_vmem [thread:$0]  %s1300_s1, 9984, %s18_s13, [#allocation3], %s1077_s22, %s1077_s22, %s1078_s23  }
  0x12   :  { %1072 = dma.done.wait [#allocation3], 9984  }
  0x13   :  { %1073 = vsyncadd [#allocation3], 4294957312  ;;  %v1079_v0 = vmov 0.0   ;;  %v1080_v1 = vmov 0   ;;  %vm138_vm0 = vcmask 1044480   ;;  %vm1081_vm1 = vmmov 1  }
  0x14   :  { %325 = vmatprep.mubr.f32.mxu1 %v1079_v0  ;;  %242 = vmatprep.mubr.f32.mxu0 %v1079_v0  ;;  %vm1122_vm2 = vmpackc.low %vm138_vm0, %vm1081_vm1  ;;  %v35_v3 = vld [vmem:[#allocation2 + $0x18] sm:$0xff]  ;;  %v48_v4 = vld [vmem:[#allocation2 + $0x80] sm:$0xff]  ;;  %vm128_vm3 = vcmask 367616   ;;  %vm1083_vm4 = vmmov 0   ;;  %vm807_vm5 = vcmask 523264   ;;  %vm834_vm6 = vcmask 519168  }
  0x15   :  { %1026 = vset.pattern.permute.xlu0 %v1080_v1  ;;  %1027 = vset.pattern.permute.xlu1 %v1080_v1  ;;  %v33_v5 = vld [vmem:[#allocation2 + $0x8] sm:$0xff]  ;;  %v931_v6 = vpack.c.bf16 %v48_v4, %v35_v3  ;;  %v46_v7 = vld [vmem:[#allocation2 + $0x70] sm:$0xff]  ;;  %v47_v9 = vld [vmem:[#allocation2 + $0x78] sm:$0xff] }
  0x16   :  { %v34_v8 = vld [vmem:[#allocation2 + $0x10] sm:$0xff]  ;;  %v917_v10 = vpack.c.bf16 %v46_v7, %v33_v5  ;;  %v32_v12 = vld [vmem:[#allocation2] sm:$0xff]  ;;  %v45_v13 = vld [vmem:[#allocation2 + $0x68] sm:$0xff] }
  0x17   :  { %v933_v11 = vpack.c.bf16 %v47_v9, %v34_v8  ;;  %v61_v14 = vld [vmem:[#allocation2 + $0xe8] sm:$0xff]  ;;  %932 = vmatprep.subr.bf16.mxu1 %v931_v6  ;;  %v919_v15 = vpack.c.bf16 %v45_v13, %v32_v12  ;;  %v74_v16 = vld [vmem:[#allocation2 + $0x150] sm:$0xff]  ;;  %v59_v17 = vld [vmem:[#allocation2 + $0xd8] sm:$0xff] }
  0x18   :  { %v72_v18 = vld [vmem:[#allocation2 + $0x140] sm:$0xff]  ;;  %918 = vmatprep.subr.bf16.mxu0 %v917_v10  ;;  %v935_v19 = vpack.c.bf16 %v74_v16, %v61_v14  ;;  %v73_v22 = vld [vmem:[#allocation2 + $0x148] sm:$0xff]  ;;  %v58_v23 = vld [vmem:[#allocation2 + $0xd0] sm:$0xff] }
  0x19   :  { %934 = vmatpush1.bf16.msra.mxu1 %v933_v11  ;;  %v921_v20 = vpack.c.bf16 %v72_v18, %v59_v17  ;;  %v60_v21 = vld [vmem:[#allocation2 + $0xe0] sm:$0xff]  ;;  %920 = vmatpush1.bf16.msra.mxu0 %v919_v15  ;;  %v71_v25 = vld [vmem:[#allocation2 + $0x138] sm:$0xff]  ;;  %v85_v30 = vld [vmem:[#allocation2 + $0x1a8] sm:$0xff] }
  0x1a   :  { %v937_v24 = vpack.c.bf16 %v73_v22, %v60_v21  ;;  %v87_v26 = vld [vmem:[#allocation2 + $0x1b8] sm:$0xff]  ;;  %v100_v27 = vld [vmem:[#allocation2 + $0x220] sm:$0x1f]  ;;  %936 = vmatprep.subr.bf16.mxu1 %v935_v19  ;;  %v923_v28 = vpack.c.bf16 %v71_v25, %v58_v23  ;;  %v98_v31 = vld [vmem:[#allocation2 + $0x210] sm:$0x1f] }
  0x1b   :  { %922 = vmatprep.subr.bf16.mxu0 %v921_v20  ;;  %v939_v29 = vpack.c.bf16 %v100_v27, %v87_v26  ;;  %v86_v32 = vld [vmem:[#allocation2 + $0x1b0] sm:$0xff]  ;;  %v925_v33 = vpack.c.bf16 %v98_v31, %v85_v30  ;;  %v99_v34 = vld [vmem:[#allocation2 + $0x218] sm:$0x1f]  ;;  %v84_v35 = vld [vmem:[#allocation2 + $0x1a0] sm:$0xff] }
  0x1c   :  { %v97_v36 = vld [vmem:[#allocation2 + $0x208] sm:$0x1f]  ;;  %v942_v37 = vpack.c.bf16 %v99_v34, %v86_v32  ;;  %v39_v38 = vld [vmem:[#allocation2 + $0x38] sm:$0xff]  ;;  %v52_v39 = vld [vmem:[#allocation2 + $0xa0] sm:$0xff] }
  0x1d   :  { %938 = vmatpush1.bf16.msra.mxu1 %v937_v24  ;;  %924 = vmatpush1.bf16.msra.mxu0 %v923_v28  ;;  %v928_v40 = vpack.c.bf16 %v97_v36, %v84_v35  ;;  %v959_v41 = vpack.c.bf16 %v52_v39, %v39_v38  ;;  %v37_v42 = vld [vmem:[#allocation2 + $0x28] sm:$0xff]  ;;  %v50_v43 = vld [vmem:[#allocation2 + $0x90] sm:$0xff]  ;;  %v51_v46 = vld [vmem:[#allocation2 + $0x98] sm:$0xff] }
  0x1e   :  { %941 = vmatprep.subr.msk.bf16.mxu1 %vm1122_vm2, %v939_v29  ;;  %v38_v44 = vld [vmem:[#allocation2 + $0x30] sm:$0xff]  ;;  %927 = vmatprep.subr.msk.bf16.mxu0 %vm1122_vm2, %v925_v33  ;;  %v945_v45 = vpack.c.bf16 %v50_v43, %v37_v42  ;;  %v36_v47 = vld [vmem:[#allocation2 + $0x20] sm:$0xff]  ;;  %v49_v48 = vld [vmem:[#allocation2 + $0x88] sm:$0xff] }
  0x1f   :  { %v65_v49 = vld [vmem:[#allocation2 + $0x108] sm:$0xff]  ;;  %v78_v50 = vld [vmem:[#allocation2 + $0x170] sm:$0xff]  ;;  %v1135_v51 = vld [vmem:[%s1299_s0] sm:$0xff]  ;;  %v961_v52 = vpack.c.bf16 %v51_v46, %v38_v44  ;;  %v947_v55 = vpack.c.bf16 %v49_v48, %v36_v47 }
  0x20   :  { %v63_v53 = vld [vmem:[#allocation2 + $0xf8] sm:$0xff]  ;;  %v76_v54 = vld [vmem:[#allocation2 + $0x160] sm:$0xff]  ;;  %v77_v57 = vld [vmem:[#allocation2 + $0x168] sm:$0xff]  ;;  %v963_v58 = vpack.c.bf16 %v78_v50, %v65_v49 }
  0x21   :  { %944 = vmatpush1.bf16.msk.msra.mxu1 %vm1122_vm2, %v942_v37  ;;  %930 = vmatpush1.bf16.msk.msra.mxu0 %vm1122_vm2, %v928_v40  ;;  %v64_v56 = vld [vmem:[#allocation2 + $0x100] sm:$0xff]  ;;  %v62_v59 = vld [vmem:[#allocation2 + $0xf0] sm:$0xff]  ;;  %v75_v60 = vld [vmem:[#allocation2 + $0x158] sm:$0xff]  ;;  %v949_v61 = vpack.c.bf16 %v76_v54, %v63_v53 }
  0x22   :  { %960 = vmatprep.subr.bf16.mxu1 %v959_v41  ;;  %946 = vmatprep.subr.bf16.mxu0 %v945_v45  ;;  %v91_v62 = vld [vmem:[#allocation2 + $0x1d8] sm:$0xff]  ;;  %v104_v63 = vld [vmem:[#allocation2 + $0x240] sm:$0x1f]  ;;  %v1146_v1 = vld [vmem:[%s1299_s0 + $0x8] sm:$0xff]  ;;  %v965_v3 = vpack.c.bf16 %v77_v57, %v64_v56  ;;  %v951_v6 = vpack.c.bf16 %v75_v60, %v62_v59 }
  0x23   :  { %v89_v4 = vld [vmem:[#allocation2 + $0x1c8] sm:$0xff]  ;;  %v102_v5 = vld [vmem:[#allocation2 + $0x230] sm:$0x1f]  ;;  %v103_v8 = vld [vmem:[#allocation2 + $0x238] sm:$0x1f]  ;;  %v967_v9 = vpack.c.bf16 %v104_v63, %v91_v62 }
  0x24   :  { %860 = vmatmul.mubr.msk.f32.vlgmr.msra.gmra.mrb[0].mxu1 %vm128_vm3, %v1135_v51  ;;  %855 = vmatmul.mubr.msk.f32.vlgmr.msra.gmra.mrb[0].mxu0 %vm128_vm3, %v1135_v51  ;;  %v90_v7 = vld [vmem:[#allocation2 + $0x1d0] sm:$0xff]  ;;  %v88_v10 = vld [vmem:[#allocation2 + $0x1c0] sm:$0xff]  ;;  %v101_v11 = vld [vmem:[#allocation2 + $0x228] sm:$0x1f]  ;;  %v953_v12 = vpack.c.bf16 %v102_v5, %v89_v4 }
  0x25   :  { %962 = vmatpush1.bf16.msra.mxu1 %v961_v52  ;;  %948 = vmatpush1.bf16.msra.mxu0 %v947_v55  ;;  %v43_v13 = vld [vmem:[#allocation2 + $0x58] sm:$0xff]  ;;  %v56_v14 = vld [vmem:[#allocation2 + $0xc0] sm:$0xff]  ;;  %v1157_v15 = vld [vmem:[%s1299_s0 + $0x10] sm:$0xf]  ;;  %v970_v16 = vpack.c.bf16 %v103_v8, %v90_v7  ;;  %v956_v19 = vpack.c.bf16 %v101_v11, %v88_v10 }
  0x26   :  { %331 = vmatprep.mubr.f32.mxu1 %v1079_v0  ;;  %248 = vmatprep.mubr.f32.mxu0 %v1079_v0  ;;  %v41_v17 = vld [vmem:[#allocation2 + $0x48] sm:$0xff]  ;;  %v54_v18 = vld [vmem:[#allocation2 + $0xb0] sm:$0xff]  ;;  %v55_v21 = vld [vmem:[#allocation2 + $0xb8] sm:$0xff]  ;;  %v987_v22 = vpack.c.bf16 %v56_v14, %v43_v13 }
  0x27   :  { %964 = vmatprep.subr.bf16.mxu1 %v963_v58  ;;  %950 = vmatprep.subr.bf16.mxu0 %v949_v61  ;;  %v42_v20 = vld [vmem:[#allocation2 + $0x50] sm:$0xff]  ;;  %v40_v23 = vld [vmem:[#allocation2 + $0x40] sm:$0xff]  ;;  %v53_v24 = vld [vmem:[#allocation2 + $0xa8] sm:$0xff]  ;;  %v973_v25 = vpack.c.bf16 %v54_v18, %v41_v17  ;;  %v1082_v58 = vmov 0.0|0.0  }
  0x28   :  { %861 = vmatmul.mubr.msk.f32.gmra.mrb[2].mxu1 %vm128_vm3, %v1146_v1  ;;  %856 = vmatmul.mubr.msk.f32.gmra.mrb[2].mxu0 %vm128_vm3, %v1146_v1  ;;  %v69_v26 = vld [vmem:[#allocation2 + $0x128] sm:$0xff]  ;;  %v82_v27 = vld [vmem:[#allocation2 + $0x190] sm:$0xff]  ;;  %v989_v28 = vpack.c.bf16 %v55_v21, %v42_v20  ;;  %v67_v29 = vld [vmem:[#allocation2 + $0x118] sm:$0xff]  ;;  %v975_v31 = vpack.c.bf16 %v53_v24, %v40_v23 }
  0x29   :  { %966 = vmatpush1.bf16.msra.mxu1 %v965_v3  ;;  %952 = vmatpush1.bf16.msra.mxu0 %v951_v6  ;;  %v80_v30 = vld [vmem:[#allocation2 + $0x180] sm:$0xff]  ;;  %v81_v33 = vld [vmem:[#allocation2 + $0x188] sm:$0xff]  ;;  %v991_v34 = vpack.c.bf16 %v82_v27, %v69_v26  ;;  %v66_v35 = vld [vmem:[#allocation2 + $0x110] sm:$0xff] }
  0x2a   :  { %337 = vmatprep.mubr.f32.mxu1 %v1079_v0  ;;  %254 = vmatprep.mubr.f32.mxu0 %v1079_v0  ;;  %v68_v32 = vld [vmem:[#allocation2 + $0x120] sm:$0xff]  ;;  %v79_v36 = vld [vmem:[#allocation2 + $0x178] sm:$0xff]  ;;  %v977_v37 = vpack.c.bf16 %v80_v30, %v67_v29  ;;  %v93_v41 = vld [vmem:[#allocation2 + $0x1e8] sm:$0xff] }
  0x2b   :  { %969 = vmatprep.subr.msk.bf16.mxu1 %vm1122_vm2, %v967_v9  ;;  %955 = vmatprep.subr.msk.bf16.mxu0 %vm1122_vm2, %v953_v12  ;;  %v95_v38 = vld [vmem:[#allocation2 + $0x1f8] sm:$0xff]  ;;  %v108_v39 = vld [vmem:[#allocation2 + $0x260] sm:$0x1f]  ;;  %v993_v40 = vpack.c.bf16 %v81_v33, %v68_v32  ;;  %v106_v42 = vld [vmem:[#allocation2 + $0x250] sm:$0x1f]  ;;  %v979_v43 = vpack.c.bf16 %v79_v36, %v66_v35 }
  0x2c   :  { %862 = vmatmul.mubr.msk.f32.gmra.mrb[4].mxu1 %vm128_vm3, %v1157_v15  ;;  %857 = vmatmul.mubr.msk.f32.gmra.mrb[4].mxu0 %vm128_vm3, %v1157_v15  ;;  %v94_v44 = vld [vmem:[#allocation2 + $0x1f0] sm:$0xff]  ;;  %v107_v45 = vld [vmem:[#allocation2 + $0x258] sm:$0x1f]  ;;  %v995_v46 = vpack.c.bf16 %v108_v39, %v95_v38  ;;  %v92_v47 = vld [vmem:[#allocation2 + $0x1e0] sm:$0xff]  ;;  %v981_v49 = vpack.c.bf16 %v106_v42, %v93_v41 }
  0x2d   :  { %972 = vmatpush1.bf16.msk.msra.mxu1 %vm1122_vm2, %v970_v16  ;;  %958 = vmatpush1.bf16.msk.msra.mxu0 %vm1122_vm2, %v956_v19  ;;  %v105_v48 = vld [vmem:[#allocation2 + $0x248] sm:$0x1f]  ;;  %v998_v50 = vpack.c.bf16 %v107_v45, %v94_v44  ;;  %v44_v53 = vld [vmem:[#allocation2 + $0x60] sm:$0xff]  ;;  %v70_v56 = vld [vmem:[#allocation2 + $0x130] sm:$0xff] }
  0x2e   :  { %491 = vmatprep.mubr.f32.mxu1 %v1079_v0  ;;  %408 = vmatprep.mubr.f32.mxu0 %v1079_v0  ;;  %v984_v52 = vpack.c.bf16 %v105_v48, %v92_v47  ;;  %v57_v54 = vld [vmem:[#allocation2 + $0xc8] sm:$0xff]  ;;  %v83_v57 = vld [vmem:[#allocation2 + $0x198] sm:$0xff]  ;;  %v96_v60 = vld [vmem:[#allocation2 + $0x200] sm:$0xff] }
  0x2f   :  { %988 = vmatprep.subr.bf16.mxu1 %v987_v22  ;;  %974 = vmatprep.subr.bf16.mxu0 %v973_v25  ;;  %v1002_v55 = vpack.c.bf16 %v57_v54, %v44_v53  ;;  %v1005_v59 = vpack.c.bf16 %v83_v57, %v70_v56  ;;  %v109_v61 = vld [vmem:[#allocation2 + $0x268] sm:$0x1f]  ;;  %v110_v63 = vld [vmem:[%s1301_s2] sm:$0xff]  ;;  %v112_v3 = vld [vmem:[%s1301_s2 + $0x10] sm:$0xf] }
  0x30   :  { %870 = vmatmul.mubr.msk.f32.vlgmr.msra.gmra.mrb[6].mxu1 %vm128_vm3, %v1135_v51  ;;  %865 = vmatmul.mubr.msk.f32.vlgmr.msra.gmra.mrb[6].mxu0 %vm128_vm3, %v1135_v51  ;;  %v1008_v62 = vpack.c.bf16 %v109_v61, %v96_v60  ;;  %v111_v4 = vld [vmem:[%s1301_s2 + $0x8] sm:$0xff]  ;;  %s1084_s2 = smov [#allocation5]  }
  0x31   :  { %990 = vmatpush1.bf16.msra.mxu1 %v989_v28  ;;  %976 = vmatpush1.bf16.msra.mxu0 %v975_v31  ;;  %s841_s9 = sshll.u32 %s1084_s2, 4  ;;  %s842_s9 = int_to_ptr.vmem [resolvable:$true] %s841_s9 }
  0x32   :  { %497 = vmatprep.mubr.f32.mxu1 %v1079_v0  ;;  %414 = vmatprep.mubr.f32.mxu0 %v1079_v0  ;;  %s1050_s10 = scalar_lea.vmem %s842_s9, 4992  ;;  %p1055_p9 = scmp.lt.s32.totalorder %s842_s9, %s842_s9 }
  0x33   :  { %992 = vmatprep.subr.bf16.mxu1 %v991_v34  ;;  %978 = vmatprep.subr.bf16.mxu0 %v977_v37  ;;  %p1051_p8 = scmp.ne.s32.totalorder %s842_s9, %s1050_s10  ;;  %p1056_p10 = scmp.lt.s32.totalorder %s1050_s10, %s1050_s10 }
  0x34   :  { %871 = vmatmul.mubr.msk.f32.gmra.mrb[8].mxu1 %vm128_vm3, %v1146_v1  ;;  %866 = vmatmul.mubr.msk.f32.gmra.mrb[8].mxu0 %vm128_vm3, %v1146_v1 }
  0x35   :  { %994 = vmatpush1.bf16.msra.mxu1 %v993_v40  ;;  %980 = vmatpush1.bf16.msra.mxu0 %v979_v43  ;;  %p1057_p11 = por %p1056_p10, %p1055_p9 }
  0x36   :  { %503 = vmatprep.mubr.f32.mxu1 %v1079_v0  ;;  %420 = vmatprep.mubr.f32.mxu0 %v1079_v0 }
  0x37   :  { %997 = vmatprep.subr.msk.bf16.mxu1 %vm1122_vm2, %v995_v46  ;;  %983 = vmatprep.subr.msk.bf16.mxu0 %vm1122_vm2, %v981_v49  ;;  %p1058_p12 = pnand %p1057_p11, %p1051_p8 }
  0x38   :  { %872 = vmatmul.mubr.msk.f32.gmra.mrb[10].mxu1 %vm128_vm3, %v1157_v15  ;;  %867 = vmatmul.mubr.msk.f32.gmra.mrb[10].mxu0 %vm128_vm3, %v1157_v15 }
  0x39   :  { %1000 = vmatpush1.bf16.msk.msra.mxu1 %vm1122_vm2, %v998_v50  ;;  %986 = vmatpush1.bf16.msk.msra.mxu0 %vm1122_vm2, %v984_v52 }
  0x3a   :  { %657 = vmatprep.mubr.f32.mxu1 %v1079_v0  ;;  %574 = vmatprep.mubr.f32.mxu0 %v1079_v0 }
  0x3b   :  { %1011 = vmatprep.subr.bf16.mxu1 %v1082_v58  ;;  %1001 = vmatprep.subr.bf16.mxu0 %v1082_v58 }
  0x3c   :  { %880 = vmatmul.mubr.msk.f32.vlgmr.msra.gmra.mrb[12].mxu1 %vm128_vm3, %v1135_v51  ;;  %875 = vmatmul.mubr.msk.f32.vlgmr.msra.gmra.mrb[12].mxu0 %vm128_vm3, %v1135_v51 }
  0x3d   :  { %1014 = vmatpush3.bf16.msra.mxu1 %v1002_v55  ;;  %1003 = vmatpush3.bf16.msra.mxu0 %v1002_v55 }
  0x3e   :  { %663 = vmatprep.mubr.f32.mxu1 %v1079_v0  ;;  %580 = vmatprep.mubr.f32.mxu0 %v1079_v0 }
  0x3f   :  { %1012 = vmatprep.subr.bf16.mxu1 %v1082_v58  ;;  %1004 = vmatprep.subr.bf16.mxu0 %v1082_v58 }
  0x40   :  { %881 = vmatmul.mubr.msk.f32.gmra.mrb[14].mxu1 %vm128_vm3, %v1146_v1  ;;  %876 = vmatmul.mubr.msk.f32.gmra.mrb[14].mxu0 %vm128_vm3, %v1146_v1 }
  0x41   :  { %1015 = vmatpush3.bf16.msra.mxu1 %v1005_v59  ;;  %1006 = vmatpush3.bf16.msra.mxu0 %v1005_v59 }
  0x42   :  { %669 = vmatprep.mubr.f32.mxu1 %v1079_v0  ;;  %586 = vmatprep.mubr.f32.mxu0 %v1079_v0 }
  0x43   :  { %1013 = vmatprep.subr.bf16.mxu1 %v1082_v58  ;;  %1007 = vmatprep.subr.bf16.mxu0 %v1082_v58 }
  0x44   :  { %882 = vmatmul.mubr.msk.f32.gmra.mrb[16].mxu1 %vm128_vm3, %v1157_v15  ;;  %877 = vmatmul.mubr.msk.f32.gmra.mrb[16].mxu0 %vm128_vm3, %v1157_v15 }
  0x45   :  { %1016 = vmatpush3.bf16.msk.msra.mxu1 %vm1122_vm2, %v1008_v62  ;;  %1010 = vmatpush3.bf16.msk.msra.mxu0 %vm1122_vm2, %v1008_v62 }
  0x46   :  { %911 = vmatprep.mubr.msk.f32.mxu1 %vm1083_vm4, %v1079_v0  ;;  %908 = vmatprep.mubr.msk.f32.mxu0 %vm1083_vm4, %v1079_v0 }
  0x47   :  { %115 = vperm.xlu0 %1026, %v110_v63   ;;  %125 = vperm.xlu1 %1027, %v112_v3  }
  0x48   :  { %912 = vmatmul.mubr.msk.f32.vlgmr.msra.gmra.mrb[18].mxu1 %vm128_vm3, %v1146_v1  ;;  %909 = vmatmul.mubr.msk.f32.vlgmr.msra.gmra.mrb[18].mxu0 %vm128_vm3, %v1135_v51 }
  0x49   :  { %914 = vmatprep.mubr.msk.f32.mxu1 %vm1083_vm4, %v1079_v0 }
  0x4b   :  { %120 = vperm.xlu0 %1026, %v111_v4  }
  0x4c   :  { %915 = vmatmul.mubr.msk.f32.gmra.mrb[20].mxu1 %vm128_vm3, %v1157_v15 }
  0xc6   :  { %v1239_v2 = vpop.permute.xlu0 %115  ;;  %v1250_v21 = vpop.permute.xlu1 %125 }
  0xca   :  { %v1244_v10 = vpop.permute.xlu0 %120 }
  0xf7   :  { %v327_v5 = vpop.f32.mrb[0].mxu1  ;;  %v244_v7 = vpop.f32.mrb[0].mxu0 }
  0xf8   :  { %v328_v6 = vadd.f32 %v327_v5, %v1239_v2  ;;  %v329_v1 = vpop.f32.mrb[1].mxu1  ;;  %v245_v9 = vadd.f32 %v244_v7, %v1239_v2  ;;  %v246_v51 = vpop.f32.mrb[1].mxu0 }
  0xf9   :  { %v330_v8 = vadd.f32 %v329_v1, %v1239_v2  ;;  %v247_v0 = vadd.f32 %v246_v51, %v1239_v2 }
  0xfa   :  { %v758_v11 = vmax.f32 %v328_v6, 0.0  ;;  %v756_v13 = vmax.f32 %v245_v9, 0.0 }
  0xfb   :  { %v759_v12 = vmax.f32 %v330_v8, 0.0  ;;  %v333_v14 = vpop.f32.mrb[2].mxu1  ;;  %v757_v16 = vmax.f32 %v247_v0, 0.0  ;;  %v250_v18 = vpop.f32.mrb[2].mxu0 }
  0xfc   :  { %797 = vst [vmem:[#allocation5 + $0x10] sm:$0xff] %v758_v11  ;;  %v334_v15 = vadd.f32 %v333_v14, %v1244_v10  ;;  %v335_v17 = vpop.f32.mrb[3].mxu1  ;;  %795 = vst [vmem:[#allocation5] sm:$0xff] %v756_v13  ;;  %v251_v20 = vadd.f32 %v250_v18, %v1244_v10  ;;  %v252_v22 = vpop.f32.mrb[3].mxu0 }
  0xfd   :  { %798 = vst [vmem:[#allocation5 + $0x18] sm:$0xff] %v759_v12  ;;  %v336_v19 = vadd.f32 %v335_v17, %v1244_v10  ;;  %796 = vst [vmem:[#allocation5 + $0x8] sm:$0xff] %v757_v16  ;;  %v253_v24 = vadd.f32 %v252_v22, %v1244_v10 }
  0xfe   :  { %v771_v23 = vmax.f32 %v334_v15, 0.0  ;;  %v769_v26 = vmax.f32 %v251_v20, 0.0 }
  0xff   :  { %v772_v25 = vmax.f32 %v336_v19, 0.0  ;;  %v339_v27 = vpop.f32.mrb[4].mxu1  ;;  %v770_v29 = vmax.f32 %v253_v24, 0.0  ;;  %v256_v31 = vpop.f32.mrb[4].mxu0 }
 0x100   :  { %811 = vst [vmem:[#allocation5 + $0x78] sm:$0xff] %v771_v23  ;;  %v340_v28 = vadd.f32 %v339_v27, %v1250_v21  ;;  %v341_v30 = vpop.f32.mrb[5].mxu1  ;;  %809 = vst [vmem:[#allocation5 + $0x68] sm:$0xff] %v769_v26  ;;  %v257_v33 = vadd.f32 %v256_v31, %v1250_v21  ;;  %v258_v34 = vpop.f32.mrb[5].mxu0 }
 0x101   :  { %812 = vst [vmem:[#allocation5 + $0x80] sm:$0xff] %v772_v25  ;;  %v342_v32 = vadd.f32 %v341_v30, %v1250_v21  ;;  %810 = vst [vmem:[#allocation5 + $0x70] sm:$0xff] %v770_v29  ;;  %v259_v36 = vadd.f32 %v258_v34, %v1250_v21 }
 0x102   :  { %v784_v35 = vmax.f32 %v340_v28, 0.0  ;;  %v782_v38 = vmax.f32 %v257_v33, 0.0 }
 0x103   :  { %v785_v37 = vmax.f32 %v342_v32, 0.0  ;;  %v493_v39 = vpop.f32.mrb[6].mxu1  ;;  %v783_v41 = vmax.f32 %v259_v36, 0.0  ;;  %v410_v43 = vpop.f32.mrb[6].mxu0 }
 0x104   :  { %824 = vst [vmem:[#allocation5 + $0xe0] sm:$0xf] %v784_v35  ;;  %v494_v40 = vadd.f32 %v493_v39, %v1239_v2  ;;  %v495_v42 = vpop.f32.mrb[7].mxu1  ;;  %822 = vst [vmem:[#allocation5 + $0xd0] sm:$0xf] %v782_v38  ;;  %v411_v45 = vadd.f32 %v410_v43, %v1239_v2  ;;  %v412_v46 = vpop.f32.mrb[7].mxu0 }
 0x105   :  { %825 = vst [vmem:[#allocation5 + $0xe8] sm:$0xf] %v785_v37  ;;  %v496_v44 = vadd.f32 %v495_v42, %v1239_v2  ;;  %823 = vst [vmem:[#allocation5 + $0xd8] sm:$0xf] %v783_v41  ;;  %v413_v48 = vadd.f32 %v412_v46, %v1239_v2 }
 0x106   :  { %v762_v47 = vmax.f32 %v494_v40, 0.0  ;;  %v760_v50 = vmax.f32 %v411_v45, 0.0 }
 0x107   :  { %v763_v49 = vmax.f32 %v496_v44, 0.0  ;;  %v499_v52 = vpop.f32.mrb[8].mxu1  ;;  %v761_v54 = vmax.f32 %v413_v48, 0.0  ;;  %v416_v56 = vpop.f32.mrb[8].mxu0 }
 0x108   :  { %801 = vst [vmem:[#allocation5 + $0x30] sm:$0xff] %v762_v47  ;;  %v500_v53 = vadd.f32 %v499_v52, %v1244_v10  ;;  %v501_v55 = vpop.f32.mrb[9].mxu1  ;;  %799 = vst [vmem:[#allocation5 + $0x20] sm:$0xff] %v760_v50  ;;  %v417_v58 = vadd.f32 %v416_v56, %v1244_v10  ;;  %v418_v59 = vpop.f32.mrb[9].mxu0 }
 0x109   :  { %802 = vst [vmem:[#allocation5 + $0x38] sm:$0xff] %v763_v49  ;;  %v502_v57 = vadd.f32 %v501_v55, %v1244_v10  ;;  %800 = vst [vmem:[#allocation5 + $0x28] sm:$0xff] %v761_v54  ;;  %v419_v61 = vadd.f32 %v418_v59, %v1244_v10 }
 0x10a   :  { %v775_v60 = vmax.f32 %v500_v53, 0.0  ;;  %v773_v63 = vmax.f32 %v417_v58, 0.0 }
 0x10b   :  { %v776_v62 = vmax.f32 %v502_v57, 0.0  ;;  %v505_v3 = vpop.f32.mrb[10].mxu1  ;;  %v774_v5 = vmax.f32 %v419_v61, 0.0  ;;  %v422_v1 = vpop.f32.mrb[10].mxu0 }
 0x10c   :  { %815 = vst [vmem:[#allocation5 + $0x98] sm:$0xff] %v775_v60  ;;  %v506_v4 = vadd.f32 %v505_v3, %v1250_v21  ;;  %v507_v6 = vpop.f32.mrb[11].mxu1  ;;  %813 = vst [vmem:[#allocation5 + $0x88] sm:$0xff] %v773_v63  ;;  %v423_v8 = vadd.f32 %v422_v1, %v1250_v21  ;;  %v424_v9 = vpop.f32.mrb[11].mxu0 }
 0x10d   :  { %816 = vst [vmem:[#allocation5 + $0xa0] sm:$0xff] %v776_v62  ;;  %v508_v7 = vadd.f32 %v507_v6, %v1250_v21  ;;  %814 = vst [vmem:[#allocation5 + $0x90] sm:$0xff] %v774_v5  ;;  %v425_v11 = vadd.f32 %v424_v9, %v1250_v21 }
 0x10e   :  { %v788_v51 = vmax.f32 %v506_v4, 0.0  ;;  %v786_v12 = vmax.f32 %v423_v8, 0.0 }
 0x10f   :  { %v789_v0 = vmax.f32 %v508_v7, 0.0  ;;  %v659_v13 = vpop.f32.mrb[12].mxu1  ;;  %v787_v15 = vmax.f32 %v425_v11, 0.0  ;;  %v576_v17 = vpop.f32.mrb[12].mxu0 }
 0x110   :  { %828 = vst [vmem:[#allocation5 + $0x100] sm:$0xf] %v788_v51  ;;  %v660_v14 = vadd.f32 %v659_v13, %v1239_v2  ;;  %v661_v16 = vpop.f32.mrb[13].mxu1  ;;  %826 = vst [vmem:[#allocation5 + $0xf0] sm:$0xf] %v786_v12  ;;  %v577_v19 = vadd.f32 %v576_v17, %v1239_v2  ;;  %v578_v20 = vpop.f32.mrb[13].mxu0 }
 0x111   :  { %829 = vst [vmem:[#allocation5 + $0x108] sm:$0xf] %v789_v0  ;;  %v662_v18 = vadd.f32 %v661_v16, %v1239_v2  ;;  %827 = vst [vmem:[#allocation5 + $0xf8] sm:$0xf] %v787_v15  ;;  %v579_v23 = vadd.f32 %v578_v20, %v1239_v2 }
 0x112   :  { %v766_v22 = vmax.f32 %v660_v14, 0.0  ;;  %v764_v25 = vmax.f32 %v577_v19, 0.0 }
 0x113   :  { %v767_v24 = vmax.f32 %v662_v18, 0.0  ;;  %v665_v26 = vpop.f32.mrb[14].mxu1  ;;  %v765_v28 = vmax.f32 %v579_v23, 0.0  ;;  %v582_v30 = vpop.f32.mrb[14].mxu0 }
 0x114   :  { %805 = vst [vmem:[#allocation5 + $0x50] sm:$0xff] %v766_v22  ;;  %v666_v27 = vadd.f32 %v665_v26, %v1244_v10  ;;  %v667_v29 = vpop.f32.mrb[15].mxu1  ;;  %803 = vst [vmem:[#allocation5 + $0x40] sm:$0xff] %v764_v25  ;;  %v583_v32 = vadd.f32 %v582_v30, %v1244_v10  ;;  %v584_v33 = vpop.f32.mrb[15].mxu0 }
 0x115   :  { %806 = vst [vmem:[#allocation5 + $0x58] sm:$0xff] %v767_v24  ;;  %v668_v31 = vadd.f32 %v667_v29, %v1244_v10  ;;  %804 = vst [vmem:[#allocation5 + $0x48] sm:$0xff] %v765_v28  ;;  %v585_v35 = vadd.f32 %v584_v33, %v1244_v10 }
 0x116   :  { %v779_v34 = vmax.f32 %v666_v27, 0.0  ;;  %v777_v37 = vmax.f32 %v583_v32, 0.0 }
 0x117   :  { %v780_v36 = vmax.f32 %v668_v31, 0.0  ;;  %v671_v38 = vpop.f32.mrb[16].mxu1  ;;  %v778_v40 = vmax.f32 %v585_v35, 0.0  ;;  %v588_v42 = vpop.f32.mrb[16].mxu0 }
 0x118   :  { %819 = vst [vmem:[#allocation5 + $0xb8] sm:$0xff] %v779_v34  ;;  %v672_v39 = vadd.f32 %v671_v38, %v1250_v21  ;;  %v673_v41 = vpop.f32.mrb[17].mxu1  ;;  %817 = vst [vmem:[#allocation5 + $0xa8] sm:$0xff] %v777_v37  ;;  %v589_v44 = vadd.f32 %v588_v42, %v1250_v21  ;;  %v590_v45 = vpop.f32.mrb[17].mxu0 }
 0x119   :  { %820 = vst [vmem:[#allocation5 + $0xc0] sm:$0xff] %v780_v36  ;;  %v674_v43 = vadd.f32 %v673_v41, %v1250_v21  ;;  %818 = vst [vmem:[#allocation5 + $0xb0] sm:$0xff] %v778_v40  ;;  %v591_v47 = vadd.f32 %v590_v45, %v1250_v21 }
 0x11a   :  { %v792_v46 = vmax.f32 %v672_v39, 0.0  ;;  %v790_v49 = vmax.f32 %v589_v44, 0.0 }
 0x11b   :  { %v793_v48 = vmax.f32 %v674_v43, 0.0  ;;  %v747_v50 = vpop.f32.mrb[18].mxu1  ;;  %v791_v52 = vmax.f32 %v591_v47, 0.0  ;;  %v742_v54 = vpop.f32.mrb[18].mxu0 }
 0x11c   :  { %832 = vst [vmem:[#allocation5 + $0x120] sm:$0xf] %v792_v46  ;;  %v748_v53 = vadd.f32 %v747_v50, %v1244_v10  ;;  %v913_v55 = vpop.f32.mrb[19].mxu1  ;;  %830 = vst [vmem:[#allocation5 + $0x110] sm:$0xf] %v790_v49  ;;  %v743_v56 = vadd.f32 %v742_v54, %v1239_v2  ;;  %v910_v57 = vpop.f32.mrb[19].mxu0 }
 0x11d   :  { %833 = vst [vmem:[#allocation5 + $0x128] sm:$0xf] %v793_v48  ;;  %831 = vst [vmem:[#allocation5 + $0x118] sm:$0xf] %v791_v52 }
 0x11e   :  { %v781_v58 = vmax.f32 %v748_v53, 0.0  ;;  %v768_v59 = vmax.f32 %v743_v56, 0.0 }
 0x11f   :  { %v752_v60 = vpop.f32.mrb[20].mxu1 }
 0x120   :  { %821 = vst.msk [vmem:[#allocation5 + $0xc8] sm:$0xff] %vm807_vm5, %v781_v58  ;;  %v753_v61 = vadd.f32 %v752_v60, %v1250_v21  ;;  %v916_v62 = vpop.f32.mrb[21].mxu1  ;;  %808 = vst.msk [vmem:[#allocation5 + $0x60] sm:$0xff] %vm807_vm5, %v768_v59 }
 0x122   :  { %v794_v10 = vmax.f32 %v753_v61, 0.0 }
 0x124   :  { %835 = vst.msk [vmem:[#allocation5 + $0x130] sm:$0xf] %vm834_vm6, %v794_v10 }
 0x125   :  { %1061 = shalt.err (!%p1058_p12)
}
 0x126   :  { %s1062_s13 = scalar_lea.hbm %s1302_s3, 4992 }
 0x127   :  { %p1063_p13 = scmp.ne.s32.totalorder %s1302_s3, %s1062_s13  ;;  %p1066_p0 = scmp.lt.u32.totalorder %s1062_s13, %s1302_s3 }
 0x129   :  { %p1068_p1 = pnand %p1066_p0, %p1063_p13 }
 0x12b   :  { %1071 = shalt.err (!%p1068_p1)
}
 0x12c   :  { %847 = dma.vmem_to_hbm [thread:$0]  %s842_s9, 4992, %s1302_s3, [#allocation4], %s1077_s22, %s1077_s22, %s1078_s23  }
 0x12d   :  { %1074 = dma.done.wait [#allocation4], 4992  }
 0x12e   :  { %1075 = vsyncadd [#allocation4], 4294962304 }
 0x12f   :  { %851 = vsyncpa [#allocation3], 1 }
 0x130   :  { %852 = vsyncpa [#allocation4], 1 }

</bundles_post_ra>
